<compile_context>
chip_gen: v7x
topology: tpu7x:2x2x1
jax: 0.10.0
libtpu: 0.0.40
codegen_flags: <defaults>
</compile_context>

<pallas_src>
import jax
import jax.numpy as jnp
from jax.experimental import pallas as pl
from jax.experimental.pallas import tpu as pltpu

CLAMP_MIN = 1e-5
CLAMP_MAX = 1e6

_COLS = 1024                           # fallback lane width (multiple of 128)
_SMALL_BLOCK_BYTES = 512 * 1024        # single-block path threshold (VMEM-padded)
_TARGET_TILE_BYTES = 2 * 1024 * 1024   # ~2 MiB/buffer; x4 live buffers < 16 MiB (v5e)
_MAX_TILE_BYTES = 3 * 1024 * 1024      # hard cap before falling back to repack


def _round_up(a, m):
    return ((a + m - 1) // m) * m


def _round_down(a, m):
    return (a // m) * m


def _sublane_multiple(itemsize):
    # f32 -> 8 sublanes, bf16 -> 16 (sublane packing), 8-bit -> 32
    return max(8, 32 // itemsize)


def _pick_tile_rows(rows, cols, itemsize):
    sub = _sublane_multiple(itemsize)
    if rows <= sub:
        return max(rows, 1)            # full-extent rows: exempt from divisibility
    by_budget = max(sub, _round_down(_TARGET_TILE_BYTES // max(cols * itemsize, 1), sub))
    by_rows = rows if rows % sub == 0 else _round_down(rows, sub)
    return max(sub, min(by_budget, by_rows))


def _mean_act_kernel(x_ref, o_ref):
    # exp -> EUP slot, clamp -> VPU slot; casts happen in-register on load/store.
    y = jnp.exp(x_ref[...].astype(jnp.float32))
    o_ref[...] = jnp.clip(y, CLAMP_MIN, CLAMP_MAX).astype(o_ref.dtype)


def _mean_act_2d(x2d, tile_rows, grid_rows):
    rows, cols = x2d.shape
    n = rows * cols
    nbytes = n * jnp.dtype(x2d.dtype).itemsize
    return pl.pallas_call(
        _mean_act_kernel,
        out_shape=jax.ShapeDtypeStruct((rows, cols), x2d.dtype),
        grid=(grid_rows,),
        in_specs=[pl.BlockSpec((tile_rows, cols), lambda i: (i, 0))],
        out_specs=pl.BlockSpec((tile_rows, cols), lambda i: (i, 0)),
        compiler_params=pltpu.CompilerParams(dimension_semantics=("parallel",)),
        cost_estimate=pl.CostEstimate(
            flops=2 * n, transcendentals=n, bytes_accessed=2 * nbytes),
    )(x2d)


def mean_act(x):
    """clamp(exp(x), 1e-5, 1e6), matching MeanAct.forward, for any shape."""
    orig_shape = x.shape
    if not jnp.issubdtype(x.dtype, jnp.floating):
        x = x.astype(jnp.float32)      # torch.exp promotes integral inputs to float
    itemsize = jnp.dtype(x.dtype).itemsize

    # Collapse to 2-D (free metadata reshape for contiguous row-major arrays).
    if x.ndim == 0:
        x2d = x.reshape(1, 1)
    elif x.ndim == 1:
        x2d = x.reshape(1, -1)
    else:
        x2d = x.reshape(-1, orig_shape[-1])
    rows, cols = x2d.shape

    # Path 1: small arrays -> one full-array block (exempt from the (8,128) rule).
    vmem_padded = _round_up(rows, 32) * _round_up(cols, 128) * itemsize
    if vmem_padded <= _SMALL_BLOCK_BYTES:
        return _mean_act_2d(x2d, rows, 1).reshape(orig_shape)

    # Path 2: lane-aligned last dim -> zero-copy row tiling (~2 MiB tiles).
    if cols % 128 == 0:
        tile_rows = _pick_tile_rows(rows, cols, itemsize)
        if tile_rows * cols * itemsize <= _MAX_TILE_BYTES:
            grid_rows = pl.cdiv(rows, tile_rows)
            return _mean_act_2d(x2d, tile_rows, grid_rows).reshape(orig_shape)

    # Path 3 (fallback): large ragged shape -> flatten + pad into a lane-dense slab.
    xf = x2d.reshape(-1)
    n = xf.shape[0]
    slab_rows = pl.cdiv(n, _COLS)
    tile_rows = _pick_tile_rows(slab_rows, _COLS, itemsize)
    xp = jnp.pad(xf, (0, slab_rows * _COLS - n)).reshape(slab_rows, _COLS)
    out = _mean_act_2d(xp, tile_rows, pl.cdiv(slab_rows, tile_rows))
    return out.reshape(-1)[:n].reshape(orig_shape)


def mean_act_reference(x):
    y = jnp.clip(jnp.exp(x.astype(jnp.float32)), CLAMP_MIN, CLAMP_MAX)
    return y.astype(x.dtype)


if __name__ == "__main__":
    key = jax.random.PRNGKey(0)

    # 1) Typical [batch, features] input (lane-aligned; exercises both clamps).
    x = jax.random.normal(key, (8, 256), jnp.float32) * 6.0
    x = x.at[0, 0].set(25.0)     # exp(25)  >> 1e6  -> clamps to 1e6
    x = x.at[1, 1].set(-25.0)    # exp(-25) << 1e-5 -> clamps to 1e-5
    out = jax.block_until_ready(jax.jit(mean_act)(x))
    ref = mean_act_reference(x)
    assert out.shape == x.shape and out.dtype == x.dtype
    assert bool(jnp.allclose(out, ref, rtol=1e-5, atol=0.0))
    # clamp constants compared after f32 rounding (1e-5 is not exact in f32)
    assert float(out[0, 0]) == float(jnp.float32(CLAMP_MAX))
    assert float(out[1, 1]) == float(jnp.float32(CLAMP_MIN))

    # 2) Small 4-D ragged shape -> single full-array block path.
    x2 = jax.random.normal(jax.random.PRNGKey(1), (2, 4, 16, 16), jnp.float32) * 3.0
    out2 = jax.block_until_ready(jax.jit(mean_act)(x2))
    assert bool(jnp.allclose(out2, mean_act_reference(x2), rtol=1e-5, atol=0.0))

    # 3) Larger lane-aligned shape with a partial trailing block -> tiled fast path.
    x3 = jax.random.normal(jax.random.PRNGKey(2), (2056, 384), jnp.float32) * 4.0
    out3 = jax.block_until_ready(jax.jit(mean_act)(x3))
    assert bool(jnp.allclose(out3, mean_act_reference(x3), rtol=1e-5, atol=0.0))

    # 4) Large ragged shape -> flatten + pad fallback path.
    x4 = jax.random.normal(jax.random.PRNGKey(3), (1200, 333), jnp.float32) * 4.0
    out4 = jax.block_until_ready(jax.jit(mean_act)(x4))
    assert bool(jnp.allclose(out4, mean_act_reference(x4), rtol=1e-5, atol=0.0))

    # 5) bf16 I/O (dtype handled inside the kernel; exp/clamp still in f32).
    x5 = (jax.random.normal(jax.random.PRNGKey(4), (64, 256), jnp.float32) * 4.0
          ).astype(jnp.bfloat16)
    out5 = jax.block_until_ready(jax.jit(mean_act)(x5))
    ref5 = mean_act_reference(x5)
    assert out5.dtype == jnp.bfloat16
    assert bool(jnp.allclose(out5.astype(jnp.float32), ref5.astype(jnp.float32),
                             rtol=1e-2, atol=1e-7))

    print("KERNEL_OK")
</pallas_src>

<mosaic_0001>
module attributes {stable_mosaic.version = 11 : i64} {
  func.func @_mean_act_kernel(%arg0: i32, %arg1: memref<8x256xf32, #tpu.memory_space<vmem>>, %arg2: memref<8x256xf32, #tpu.memory_space<vmem>>) attributes {dimension_semantics = [#tpu.dimension_semantics<parallel>], iteration_bounds = array<i64: 1>, scalar_prefetch = 0 : i64, scratch_operands = 0 : i64, tpu.core_type = #tpu.core_type<tc>, window_params = [{transform_indices = @transform_0, window_bounds = array<i64: 8, 256>}, {transform_indices = @transform_1, window_bounds = array<i64: 8, 256>}]} {
    %c0 = arith.constant 0 : index
    %c0_0 = arith.constant 0 : index
    %0 = vector.load %arg1[%c0, %c0_0] : memref<8x256xf32, #tpu.memory_space<vmem>>, vector<8x256xf32>
    %1 = math.exp %0 : vector<8x256xf32>
    %cst = arith.constant 9.99999974E-6 : f32
    %cst_1 = arith.constant 1.000000e+06 : f32
    %2 = vector.broadcast %cst : f32 to vector<8x256xf32>
    %3 = arith.maximumf %2, %1 : vector<8x256xf32>
    %4 = vector.broadcast %cst_1 : f32 to vector<8x256xf32>
    %5 = arith.minimumf %4, %3 : vector<8x256xf32>
    %c0_2 = arith.constant 0 : index
    %c0_3 = arith.constant 0 : index
    %6 = vector.load %arg2[%c0_2, %c0_3] : memref<8x256xf32, #tpu.memory_space<vmem>>, vector<8x256xf32>
    tpu.vector_store %arg2[%c0_2, %c0_3], %5 {strides = array<i32>} : memref<8x256xf32, #tpu.memory_space<vmem>>, vector<8x256xf32>,
    return
  }
  func.func @transform_0(%arg0: i32) -> (i32, i32) {
    %c0_i32 = arith.constant 0 : i32
    %c0_i32_0 = arith.constant 0 : i32
    return %arg0, %c0_i32 : i32, i32
  }
  func.func @transform_1(%arg0: i32) -> (i32, i32) {
    %c0_i32 = arith.constant 0 : i32
    %c0_i32_0 = arith.constant 0 : i32
    return %arg0, %c0_i32 : i32, i32
  }
}

</mosaic_0001>

<bundles_post_ra>
// kernel: mean_act.1
= control target key start
LH: loop header
LB: loop body
LE: loop exit
PB: predicated region body
PF: predicated region fallthrough
CT: control target
= control target key end

     0   :  { %6 = vsyncpa [#allocation3], 0  ;;  %s138_s0 = inlined_call_operand.hbm [shape: f32[8,256], index: 0, kind: input, shape index: {}]   ;;  %s139_s1 = inlined_call_operand.hbm [shape: f32[8,256], index: 1, kind: output, shape index: {}]  }
   0x1   :  { %7 = vsyncpa [#allocation4], 0  ;;  %s102_s6 = smov [#allocation2]   ;;  %s54_s10 = scalar_lea.hbm %s138_s0, 256 }
   0x2   :  { %s14_s7 = sshll.u32 %s102_s6, 4  ;;  %p55_p0 = scmp.ne.s32.totalorder %s138_s0, %s54_s10  ;;  %s15_s7 = int_to_ptr.vmem [resolvable:$true] %s14_s7 }
   0x3   :  { %p58_p1 = scmp.lt.u32.totalorder %s54_s10, %s138_s0 }
   0x5   :  { %p60_p2 = pnand %p58_p1, %p55_p0 }
   0x7   :  { %63 = shalt.err (!%p60_p2)
}
   0x8   :  { %s64_s15 = scalar_lea.vmem %s15_s7, 256  ;;  %p69_p4 = scmp.lt.s32.totalorder %s15_s7, %s15_s7 }
   0x9   :  { %p65_p3 = scmp.ne.s32.totalorder %s15_s7, %s64_s15  ;;  %p70_p5 = scmp.lt.s32.totalorder %s64_s15, %s64_s15 }
   0xb   :  { %p71_p6 = por %p70_p5, %p69_p4 }
   0xd   :  { %p72_p7 = pnand %p71_p6, %p65_p3 }
   0xf   :  { %75 = shalt.err (!%p72_p7)
}
  0x10   :  { %17 = dma.hbm_to_vmem [thread:$0]  %s138_s0, 256, %s15_s7, [#allocation3]  }
  0x11   :  { %98 = dma.done.wait [#allocation3], 256  }
  0x12   :  { %99 = vsyncadd [#allocation3], 4294967040  ;;  %v21_v0 = vld [vmem:[#allocation2] sm:$0xff]  ;;  %v22_v1 = vld [vmem:[#allocation2 + $0x8] sm:$0xff]  ;;  %s103_s18 = smov [#allocation5]  }
  0x13   :  { %v23_v2 = vmul.f32 1.442695, %v21_v0  ;;  %v25_v3 = vmul.f32 1.442695, %v22_v1  ;;  %s39_s19 = sshll.u32 %s103_s18, 4  ;;  %s40_s19 = int_to_ptr.vmem [resolvable:$true] %s39_s19 }
  0x14   :  { %s76_s0 = scalar_lea.vmem %s40_s19, 256  ;;  %p81_p9 = scmp.lt.s32.totalorder %s40_s19, %s40_s19 }
  0x15   :  { %50 = vpow2.f32 %v23_v2  ;;  %p77_p8 = scmp.ne.s32.totalorder %s40_s19, %s76_s0  ;;  %p82_p10 = scmp.lt.s32.totalorder %s76_s0, %s76_s0 }
  0x16   :  { %52 = vpow2.f32 %v25_v3 }
  0x17   :  { %p83_p11 = por %p82_p10, %p81_p9 }
  0x19   :  { %p84_p12 = pnand %p83_p11, %p77_p8 }
  0x1f   :  { %v51_v4 = vpop.eup %50 }
  0x20   :  { %v53_v5 = vpop.eup %52  ;;  %v27_v6 = vmax.f32 %v51_v4, 1e-05 }
  0x21   :  { %v28_v7 = vmax.f32 %v53_v5, 1e-05 }
  0x22   :  { %v29_v8 = vmin.f32 %v27_v6, 1000000.0 }
  0x23   :  { %v30_v9 = vmin.f32 %v28_v7, 1000000.0 }
  0x24   :  { %31 = vst [vmem:[#allocation5] sm:$0xff] %v29_v8 }
  0x25   :  { %32 = vst [vmem:[#allocation5 + $0x8] sm:$0xff] %v30_v9 }
  0x26   :  { %87 = shalt.err (!%p84_p12)
}
  0x27   :  { %s88_s22 = scalar_lea.hbm %s139_s1, 256 }
  0x28   :  { %p89_p13 = scmp.ne.s32.totalorder %s139_s1, %s88_s22  ;;  %p92_p0 = scmp.lt.u32.totalorder %s88_s22, %s139_s1 }
  0x2a   :  { %p94_p1 = pnand %p92_p0, %p89_p13 }
  0x2c   :  { %97 = shalt.err (!%p94_p1)
}
  0x2d   :  { %42 = dma.vmem_to_hbm [thread:$0]  %s40_s19, 256, %s139_s1, [#allocation4]  }
  0x2e   :  { %100 = dma.done.wait [#allocation4], 256  }
  0x2f   :  { %101 = vsyncadd [#allocation4], 4294967040 }
  0x30   :  { %46 = vsyncpa [#allocation3], 1 }
  0x31   :  { %47 = vsyncpa [#allocation4], 1 }

</bundles_post_ra>
